<compile_context>
chip_gen: v6e
topology: v6e:2x2x1
jax: 0.10.0
libtpu: 0.0.40
codegen_flags: <defaults>
</compile_context>

<pallas_src>
import jax
import jax.numpy as jnp
from jax.experimental import pallas as pl
from jax.experimental.pallas import tpu as pltpu

N_PHM = 4
UNITS = 128                  # out_features (= 4 * 32)
IN_FEATURES = 600 * 4        # 2400 (= 4 * 600)
BN_EPS = 1e-5


def _eye_ph_kernel(xm_ref, s_ref, gamma_ref, beta_ref, o_ref):
    """Single-step fused PHM matmul + BatchNorm(batch stats) + ReLU.

    xm_ref:    (B*n, n*K) bf16  A-premixed activations, rows ordered (b, p)
    s_ref:     (n*K, Q)   bf16  stacked S_i^T factors (Kronecker right factor)
    gamma_ref: (1, n, Q)  f32
    beta_ref:  (1, n, Q)  f32
    o_ref:     (B, n, Q)  f32   o[b, p, q] == y[b, p*Q + q]
    """
    B, n, Q = o_ref.shape

    # MXU: bf16 x bf16, f32 accumulation.  z[(b,p), q] = linear output y[b, p*Q+q].
    z = jnp.dot(xm_ref[...], s_ref[...], preferred_element_type=jnp.float32)
    z3 = z.reshape(B, n, Q)

    # BatchNorm1d (training mode): per-channel batch mean / biased variance, eps=1e-5.
    # (The PHM bias is omitted on purpose: it cancels exactly in z - mean.)
    mean = jnp.mean(z3, axis=0, keepdims=True)
    var = jnp.mean(jnp.square(z3 - mean), axis=0, keepdims=True)
    zhat = (z3 - mean) * jax.lax.rsqrt(var + BN_EPS)
    y = zhat * gamma_ref[...] + beta_ref[...]
    o_ref[...] = jnp.maximum(y, 0.0).astype(o_ref.dtype)     # ReLU


def prepare_params(A, S, gamma, beta):
    """One-time packing of PHM / BN parameters (hoisted out of the forward path)."""
    n, Q, K = S.shape
    assert A.shape == (n, n, n)
    # sbig[i*K + s, q] = S[i, q, s]  -> right operand of the fused matmul, bf16.
    sbig = jnp.swapaxes(S, 1, 2).reshape(n * K, Q).astype(jnp.bfloat16)
    gamma3 = gamma.reshape(1, n, Q).astype(jnp.float32)
    beta3 = beta.reshape(1, n, Q).astype(jnp.float32)
    return A.astype(jnp.float32), sbig, gamma3, beta3


@jax.jit
def eye_ph_base_forward(x, A, sbig, gamma3, beta3):
    """x: (B, ...) with prod(...) == n*K (e.g. (B, 4, 600)).  Returns (B, n*Q) f32."""
    n = A.shape[0]
    nK, Q = sbig.shape
    K = nK // n
    B = x.shape[0]

    # nn.Flatten, then regroup the flat index as (r, s).
    x3 = x.reshape(B, n, K).astype(jnp.float32)

    # Kronecker trick: fold the tiny A mix into the activations instead of
    # materializing W = sum_i kron(A_i, S_i):
    #   xm[b, p, i, s] = sum_r A[i, p, r] * x[b, r, s]
    #   y[b, p*Q + q]  = sum_{i,s} xm[b, p, i, s] * S[i, q, s]
    xm = jnp.einsum("ipr,brs->bpis", A, x3).reshape(B * n, n * K).astype(jnp.bfloat16)

    flops = 2 * (B * n) * (n * K) * Q
    bytes_accessed = xm.size * 2 + sbig.size * 2 + (B * n * Q + 2 * n * Q) * 4

    out3 = pl.pallas_call(
        _eye_ph_kernel,
        out_shape=jax.ShapeDtypeStruct((B, n, Q), jnp.float32),
        grid_spec=pltpu.PrefetchScalarGridSpec(
            num_scalar_prefetch=0,
            grid=(1,),                                   # everything fits VMEM: one step
            in_specs=[
                pl.BlockSpec((B * n, n * K), lambda i: (0, 0)),   # premixed activations
                pl.BlockSpec((n * K, Q), lambda i: (0, 0)),       # stacked S factors
                pl.BlockSpec((1, n, Q), lambda i: (0, 0, 0)),     # gamma
                pl.BlockSpec((1, n, Q), lambda i: (0, 0, 0)),     # beta
            ],
            out_specs=pl.BlockSpec((B, n, Q), lambda i: (0, 0, 0)),
        ),
        compiler_params=pltpu.CompilerParams(
            dimension_semantics=("arbitrary",),
        ),
        cost_estimate=pl.CostEstimate(
            flops=flops, transcendentals=n * Q, bytes_accessed=bytes_accessed),
    )(xm, sbig, gamma3, beta3)

    # (B, n, Q) -> (B, n*Q) is a contiguous row-major regroup (free in XLA).
    return out3.reshape(B, n * Q)


def _reference_f32(x, A, S, bias, gamma, beta):
    """Full-f32 forward of the PyTorch module (dense W, highest precision)."""
    n, Q, K = S.shape
    B = x.shape[0]
    xf = x.reshape(B, -1)
    W = jnp.einsum("ipr,iqs->pqrs", A, S).reshape(n * Q, n * K)
    z = jnp.dot(xf, W.T, precision=jax.lax.Precision.HIGHEST) + bias
    mean = z.mean(axis=0, keepdims=True)
    var = jnp.square(z - mean).mean(axis=0, keepdims=True)
    y = (z - mean) * jax.lax.rsqrt(var + BN_EPS) * gamma + beta
    return jnp.maximum(y, 0.0)


def _reference_bf16(x, A, S, bias, gamma, beta):
    """Same math with the kernel's bf16 operand rounding and f32 accumulation."""
    n, Q, K = S.shape
    B = x.shape[0]
    x3 = x.reshape(B, n, K)
    xm = jnp.einsum("ipr,brs->bpis", A, x3).astype(jnp.bfloat16).astype(jnp.float32)
    sb = S.astype(jnp.bfloat16).astype(jnp.float32)
    z = jnp.einsum("bpis,iqs->bpq", xm, sb,
                   precision=jax.lax.Precision.HIGHEST).reshape(B, n * Q) + bias
    mean = z.mean(axis=0, keepdims=True)
    var = jnp.square(z - mean).mean(axis=0, keepdims=True)
    y = (z - mean) * jax.lax.rsqrt(var + BN_EPS) * gamma + beta
    return jnp.maximum(y, 0.0)


if __name__ == "__main__":
    key = jax.random.PRNGKey(0)
    k_x, k_a, k_s, k_b, k_g, k_be = jax.random.split(key, 6)

    B = 8                                                    # small batch (BN needs B >= 2)
    n, Q, K = N_PHM, UNITS // N_PHM, IN_FEATURES // N_PHM    # 4, 32, 600

    # Eye-modality input: flattens to 600*4 = 2400 features.
    x = jax.random.normal(k_x, (B, 4, 600), dtype=jnp.float32)

    # PHMLinear parameters (xavier-uniform-like deterministic init).
    lim_a = (6.0 / (n + n)) ** 0.5
    A = jax.random.uniform(k_a, (n, n, n), jnp.float32, -lim_a, lim_a)
    lim_s = (6.0 / (Q + K)) ** 0.5
    S = jax.random.uniform(k_s, (n, Q, K), jnp.float32, -lim_s, lim_s)
    bias = 0.01 * jax.random.normal(k_b, (UNITS,), dtype=jnp.float32)   # reference only

    # BatchNorm1d affine parameters (perturbed from the PyTorch default to exercise them).
    gamma = 1.0 + 0.1 * jax.random.normal(k_g, (UNITS,), dtype=jnp.float32)
    beta = 0.1 * jax.random.normal(k_be, (UNITS,), dtype=jnp.float32)

    A_p, sbig, gamma3, beta3 = prepare_params(A, S, gamma, beta)
    out = eye_ph_base_forward(x, A_p, sbig, gamma3, beta3)
    out = jax.block_until_ready(out)
    assert out.shape == (B, UNITS), out.shape

    # Exact-math check: reference reproduces the kernel's bf16 operand rounding.
    ref_q = _reference_bf16(x, A, S, bias, gamma, beta)
    assert jnp.allclose(out, ref_q, rtol=5e-3, atol=5e-3), (
        float(jnp.max(jnp.abs(out - ref_q)))
    )
    # Semantic check vs. the full-f32 PyTorch math (loose: bf16 weights per perf review);
    # also demonstrates that the PHM bias cancels exactly under batch-stat BatchNorm.
    ref_f = _reference_f32(x, A, S, bias, gamma, beta)
    assert jnp.allclose(out, ref_f, rtol=1e-1, atol=1e-1), (
        float(jnp.max(jnp.abs(out - ref_f)))
    )

    print("KERNEL_OK")
</pallas_src>

<mosaic_0001>
module attributes {stable_mosaic.version = 11 : i64} {
  func.func @_eye_ph_kernel(%arg0: i32, %arg1: memref<32x2400xbf16, #tpu.memory_space<vmem>>, %arg2: memref<2400x32xbf16, #tpu.memory_space<vmem>>, %arg3: memref<1x4x32xf32, #tpu.memory_space<vmem>>, %arg4: memref<1x4x32xf32, #tpu.memory_space<vmem>>, %arg5: memref<8x4x32xf32, #tpu.memory_space<vmem>>) attributes {dimension_semantics = [#tpu.dimension_semantics<arbitrary>], iteration_bounds = array<i64: 1>, scalar_prefetch = 0 : i64, scratch_operands = 0 : i64, tpu.core_type = #tpu.core_type<tc>, window_params = [{pipeline_mode = #tpu.pipeline_mode<synchronous>, transform_indices = @transform_0, window_bounds = array<i64: 32, 2400>}, {pipeline_mode = #tpu.pipeline_mode<synchronous>, transform_indices = @transform_1, window_bounds = array<i64: 2400, 32>}, {pipeline_mode = #tpu.pipeline_mode<synchronous>, transform_indices = @transform_2, window_bounds = array<i64: 1, 4, 32>}, {pipeline_mode = #tpu.pipeline_mode<synchronous>, transform_indices = @transform_3, window_bounds = array<i64: 1, 4, 32>}, {pipeline_mode = #tpu.pipeline_mode<synchronous>, transform_indices = @transform_4, window_bounds = array<i64: 8, 4, 32>}]} {
    %c0 = arith.constant 0 : index
    %c0_0 = arith.constant 0 : index
    %0 = vector.load %arg1[%c0, %c0_0] : memref<32x2400xbf16, #tpu.memory_space<vmem>>, vector<32x2400xbf16>
    %c0_1 = arith.constant 0 : index
    %c0_2 = arith.constant 0 : index
    %1 = vector.load %arg2[%c0_1, %c0_2] : memref<2400x32xbf16, #tpu.memory_space<vmem>>, vector<2400x32xbf16>
    %cst = arith.constant dense<0.000000e+00> : vector<32x32xf32>
    %2 = tpu.matmul %0, %1, %cst {dimension_numbers = #tpu.dot_dimension_numbers<[1], [0], [0], [1], [0, 0, 1, 1], [], []>} : vector<32x2400xbf16>, vector<2400x32xbf16>, vector<32x32xf32> -> vector<32x32xf32>
    %3 = vector.shape_cast %2 : vector<32x32xf32> to vector<8x4x32xf32>
    %cst_3 = arith.constant dense<0.000000e+00> : vector<4x32xf32>
    %4 = vector.multi_reduction <add>, %3, %cst_3 [0] : vector<8x4x32xf32> to vector<4x32xf32>
    %5 = vector.shape_cast %4 : vector<4x32xf32> to vector<1x4x32xf32>
    %cst_4 = arith.constant 8.000000e+00 : f32
    %6 = vector.broadcast %cst_4 : f32 to vector<1x4x32xf32>
    %7 = arith.divf %5, %6 : vector<1x4x32xf32>
    %8 = vector.broadcast %7 : vector<1x4x32xf32> to vector<8x4x32xf32>
    %9 = arith.subf %3, %8 : vector<8x4x32xf32>
    %10 = arith.mulf %9, %9 : vector<8x4x32xf32>
    %cst_5 = arith.constant dense<0.000000e+00> : vector<4x32xf32>
    %11 = vector.multi_reduction <add>, %10, %cst_5 [0] : vector<8x4x32xf32> to vector<4x32xf32>
    %12 = vector.shape_cast %11 : vector<4x32xf32> to vector<1x4x32xf32>
    %cst_6 = arith.constant 8.000000e+00 : f32
    %13 = vector.broadcast %cst_6 : f32 to vector<1x4x32xf32>
    %14 = arith.divf %12, %13 : vector<1x4x32xf32>
    %15 = vector.broadcast %7 : vector<1x4x32xf32> to vector<8x4x32xf32>
    %16 = arith.subf %3, %15 : vector<8x4x32xf32>
    %cst_7 = arith.constant 9.99999974E-6 : f32
    %17 = vector.broadcast %cst_7 : f32 to vector<1x4x32xf32>
    %18 = arith.addf %14, %17 : vector<1x4x32xf32>
    %19 = math.rsqrt %18 : vector<1x4x32xf32>
    %20 = vector.broadcast %19 : vector<1x4x32xf32> to vector<8x4x32xf32>
    %21 = arith.mulf %16, %20 : vector<8x4x32xf32>
    %c0_8 = arith.constant 0 : index
    %c0_9 = arith.constant 0 : index
    %c0_10 = arith.constant 0 : index
    %22 = vector.load %arg3[%c0_8, %c0_9, %c0_10] : memref<1x4x32xf32, #tpu.memory_space<vmem>>, vector<1x4x32xf32>
    %23 = vector.broadcast %22 : vector<1x4x32xf32> to vector<8x4x32xf32>
    %24 = arith.mulf %21, %23 : vector<8x4x32xf32>
    %c0_11 = arith.constant 0 : index
    %c0_12 = arith.constant 0 : index
    %c0_13 = arith.constant 0 : index
    %25 = vector.load %arg4[%c0_11, %c0_12, %c0_13] : memref<1x4x32xf32, #tpu.memory_space<vmem>>, vector<1x4x32xf32>
    %26 = vector.broadcast %25 : vector<1x4x32xf32> to vector<8x4x32xf32>
    %27 = arith.addf %24, %26 : vector<8x4x32xf32>
    %cst_14 = arith.constant 0.000000e+00 : f32
    %28 = vector.broadcast %cst_14 : f32 to vector<8x4x32xf32>
    %29 = arith.maximumf %27, %28 : vector<8x4x32xf32>
    %c0_15 = arith.constant 0 : index
    %c0_16 = arith.constant 0 : index
    %c0_17 = arith.constant 0 : index
    %30 = vector.load %arg5[%c0_15, %c0_16, %c0_17] : memref<8x4x32xf32, #tpu.memory_space<vmem>>, vector<8x4x32xf32>
    tpu.vector_store %arg5[%c0_15, %c0_16, %c0_17], %29 {strides = array<i32>} : memref<8x4x32xf32, #tpu.memory_space<vmem>>, vector<8x4x32xf32>,
    return
  }
  func.func @transform_0(%arg0: i32) -> (i32, i32) {
    %c0_i32 = arith.constant 0 : i32
    %c0_i32_0 = arith.constant 0 : i32
    %c0_i32_1 = arith.constant 0 : i32
    return %c0_i32, %c0_i32_0 : i32, i32
  }
  func.func @transform_1(%arg0: i32) -> (i32, i32) {
    %c0_i32 = arith.constant 0 : i32
    %c0_i32_0 = arith.constant 0 : i32
    %c0_i32_1 = arith.constant 0 : i32
    return %c0_i32, %c0_i32_0 : i32, i32
  }
  func.func @transform_2(%arg0: i32) -> (i32, i32, i32) {
    %c0_i32 = arith.constant 0 : i32
    %c0_i32_0 = arith.constant 0 : i32
    %c0_i32_1 = arith.constant 0 : i32
    %c0_i32_2 = arith.constant 0 : i32
    return %c0_i32, %c0_i32_0, %c0_i32_1 : i32, i32, i32
  }
  func.func @transform_3(%arg0: i32) -> (i32, i32, i32) {
    %c0_i32 = arith.constant 0 : i32
    %c0_i32_0 = arith.constant 0 : i32
    %c0_i32_1 = arith.constant 0 : i32
    %c0_i32_2 = arith.constant 0 : i32
    return %c0_i32, %c0_i32_0, %c0_i32_1 : i32, i32, i32
  }
  func.func @transform_4(%arg0: i32) -> (i32, i32, i32) {
    %c0_i32 = arith.constant 0 : i32
    %c0_i32_0 = arith.constant 0 : i32
    %c0_i32_1 = arith.constant 0 : i32
    %c0_i32_2 = arith.constant 0 : i32
    return %c0_i32, %c0_i32_0, %c0_i32_1 : i32, i32, i32
  }
}

</mosaic_0001>

<bundles_post_ra>
// kernel: eye_ph_base_forward.1
= control target key start
LH: loop header
LB: loop body
LE: loop exit
PB: predicated region body
PF: predicated region fallthrough
CT: control target
= control target key end

     0   :  { %vm1448_vm0 = vcmask 785408   ;;  %vm1957_vm1 = vcmask 257024   ;;  %s3408_s1 = inlined_call_operand.vmem [shape: bf16[2400,32], index: 1, kind: input, shape index: {}]   ;;  %s3409_s0 = inlined_call_operand.vmem [shape: bf16[32,2400], index: 0, kind: input, shape index: {}]   ;;  %s3410_s2 = inlined_call_operand.vmem [shape: f32[1,4,32], index: 2, kind: input, shape index: {}]   ;;  %s3411_s3 = inlined_call_operand.vmem [shape: f32[1,4,32], index: 3, kind: input, shape index: {}]   ;;  %s3412_s4 = inlined_call_operand.vmem [shape: f32[8,4,32], index: 4, kind: output, shape index: {}]  }
   0x1   :  { %v2521_v0 = vld [vmem:[%s3408_s1 + $0x78] sm:$0xff]   ;;  %v2525_v4 = vld [vmem:[%s3408_s1 + $0x70] sm:$0xff]   ;;  %v2529_v8 = vld [vmem:[%s3408_s1 + $0x68] sm:$0xff]  }
   0x2   :  { %v2522_v1 = vld [vmem:[%s3408_s1 + $0xf8] sm:$0xff]   ;;  %2245 = vmatprep.subr.bf16.mxu0 %v2521_v0  ;;  %v2526_v5 = vld [vmem:[%s3408_s1 + $0xf0] sm:$0xff]   ;;  %v2530_v9 = vld [vmem:[%s3408_s1 + $0xe8] sm:$0xff]  }
   0x3   :  { %v2523_v2 = vld [vmem:[%s3408_s1 + $0x38] sm:$0xff]   ;;  %2273 = vmatprep.subr.bf16.mxu1 %v2522_v1  ;;  %v2527_v6 = vld [vmem:[%s3408_s1 + $0x30] sm:$0xff]   ;;  %v2531_v10 = vld [vmem:[%s3408_s1 + $0x28] sm:$0xff]  }
   0x4   :  { %v2524_v3 = vld [vmem:[%s3408_s1 + $0xb8] sm:$0xff]   ;;  %2246 = vmatpush3.bf16.msra.mxu0 %v2523_v2  ;;  %v2528_v7 = vld [vmem:[%s3408_s1 + $0xb0] sm:$0xff]   ;;  %v2532_v11 = vld [vmem:[%s3408_s1 + $0xa8] sm:$0xff]  }
   0x5   :  { %2274 = vmatpush3.bf16.msra.mxu1 %v2524_v3  ;;  %2247 = vmatprep.subr.bf16.mxu0 %v2525_v4  ;;  %v2533_v12 = vld [vmem:[%s3408_s1 + $0x60] sm:$0xff]   ;;  %v2537_v16 = vld [vmem:[%s3408_s1 + $0x58] sm:$0xff]   ;;  %v2541_v20 = vld [vmem:[%s3408_s1 + $0x50] sm:$0xff]  }
   0x6   :  { %2275 = vmatprep.subr.bf16.mxu1 %v2526_v5  ;;  %v2534_v13 = vld [vmem:[%s3408_s1 + $0xe0] sm:$0xff]   ;;  %v2538_v17 = vld [vmem:[%s3408_s1 + $0xd8] sm:$0xff]   ;;  %v2542_v21 = vld [vmem:[%s3408_s1 + $0xd0] sm:$0xff]  }
   0x7   :  { %v2535_v14 = vld [vmem:[%s3408_s1 + $0x20] sm:$0xff]   ;;  %v2539_v18 = vld [vmem:[%s3408_s1 + $0x18] sm:$0xff]   ;;  %v2543_v22 = vld [vmem:[%s3408_s1 + $0x10] sm:$0xff]  }
   0x8   :  { %2248 = vmatpush3.bf16.msra.mxu0 %v2527_v6  ;;  %v2536_v15 = vld [vmem:[%s3408_s1 + $0xa0] sm:$0xff]   ;;  %v2540_v19 = vld [vmem:[%s3408_s1 + $0x98] sm:$0xff]   ;;  %v2544_v23 = vld [vmem:[%s3408_s1 + $0x90] sm:$0xff]  }
   0x9   :  { %2276 = vmatpush3.bf16.msra.mxu1 %v2528_v7  ;;  %2249 = vmatprep.subr.bf16.mxu0 %v2529_v8  ;;  %v2545_v24 = vld [vmem:[%s3408_s1 + $0x48] sm:$0xff]   ;;  %v2549_v28 = vld [vmem:[%s3408_s1 + $0x40] sm:$0xff]   ;;  %v2559_v36 = vld [vmem:[%s3408_s1 + $0x178] sm:$0xff]  }
   0xa   :  { %2277 = vmatprep.subr.bf16.mxu1 %v2530_v9  ;;  %v2546_v25 = vld [vmem:[%s3408_s1 + $0xc8] sm:$0xff]   ;;  %v2550_v29 = vld [vmem:[%s3408_s1 + $0xc0] sm:$0xff]   ;;  %v2560_v37 = vld [vmem:[%s3408_s1 + $0x138] sm:$0xff]  }
   0xb   :  { %v2547_v26 = vld [vmem:[%s3408_s1 + $0x8] sm:$0xff]   ;;  %v2551_v30 = vld [vmem:[%s3408_s1] sm:$0xff]   ;;  %v2561_v38 = vld [vmem:[%s3408_s1 + $0x1f8] sm:$0xff]  }
   0xc   :  { %2250 = vmatpush3.bf16.msra.mxu0 %v2531_v10  ;;  %v2548_v27 = vld [vmem:[%s3408_s1 + $0x88] sm:$0xff]   ;;  %v2552_v31 = vld [vmem:[%s3408_s1 + $0x80] sm:$0xff]   ;;  %v2562_v39 = vld [vmem:[%s3408_s1 + $0x1b8] sm:$0xff]  }
   0xd   :  { %2278 = vmatpush3.bf16.msra.mxu1 %v2532_v11  ;;  %2251 = vmatprep.subr.bf16.mxu0 %v2533_v12  ;;  %v2553_v32 = vld [vmem:[%s3409_s0] ss:$76 sps:$4 sm:$0xff]   ;;  %v2555_v33 = vld [vmem:[%s3409_s0 + $0x4] ss:$76 sps:$4 sm:$0xff]   ;;  %v2556_v34 = vld [vmem:[%s3409_s0 + $0x8] ss:$76 sps:$4 sm:$0xff]  }
   0xe   :  { %2279 = vmatprep.subr.bf16.mxu1 %v2534_v13  ;;  %v2558_v35 = vld [vmem:[%s3409_s0 + $0xc] ss:$76 sps:$4 sm:$0xff]   ;;  %1487 = vmatprep.mubr.bf16.mxu0 %v2555_v33  ;;  %v2563_v40 = vld [vmem:[%s3408_s1 + $0x170] sm:$0xff]   ;;  %v2571_v48 = vld [vmem:[%s3408_s1 + $0x160] sm:$0xff]  }
   0xf   :  { %1536 = vmatprep.mubr.bf16.mxu1 %v2558_v35  ;;  %v2564_v41 = vld [vmem:[%s3408_s1 + $0x130] sm:$0xff]   ;;  %v2567_v44 = vld [vmem:[%s3408_s1 + $0x168] sm:$0xff]   ;;  %v2572_v49 = vld [vmem:[%s3408_s1 + $0x120] sm:$0xff]  }
  0x10   :  { %2252 = vmatpush3.bf16.msra.mxu0 %v2535_v14  ;;  %v2565_v42 = vld [vmem:[%s3408_s1 + $0x1f0] sm:$0xff]   ;;  %v2568_v45 = vld [vmem:[%s3408_s1 + $0x128] sm:$0xff]   ;;  %v2573_v50 = vld [vmem:[%s3408_s1 + $0x1e0] sm:$0xff]  }
  0x11   :  { %2280 = vmatpush3.bf16.msra.mxu1 %v2536_v15  ;;  %2253 = vmatprep.subr.bf16.mxu0 %v2537_v16  ;;  %v2566_v43 = vld [vmem:[%s3408_s1 + $0x1b0] sm:$0xff]   ;;  %v2569_v46 = vld [vmem:[%s3408_s1 + $0x1e8] sm:$0xff]   ;;  %v2574_v51 = vld [vmem:[%s3408_s1 + $0x1a0] sm:$0xff]  }
  0x12   :  { %2281 = vmatprep.subr.bf16.mxu1 %v2538_v17  ;;  %v2570_v47 = vld [vmem:[%s3408_s1 + $0x1a8] sm:$0xff]   ;;  %v2575_v52 = vld [vmem:[%s3408_s1 + $0x158] sm:$0xff]   ;;  %v2579_v55 = vld [vmem:[%s3409_s0 + $0xa4] ss:$76 sps:$4 sm:$0xff]  }
  0x13   :  { %v2576_v53 = vld [vmem:[%s3408_s1 + $0x118] sm:$0xff]   ;;  %v2583_v58 = vld [vmem:[%s3409_s0 + $0xa0] ss:$76 sps:$4 sm:$0xff]   ;;  %v2585_v60 = vld [vmem:[%s3408_s1 + $0x150] sm:$0xff]  }
  0x14   :  { %2254 = vmatpush3.bf16.msra.mxu0 %v2539_v18  ;;  %v2577_v54 = vld [vmem:[%s3409_s0 + $0x9c] ss:$76 sps:$4 sm:$0xff]   ;;  %v2582_v57 = vld [vmem:[%s3409_s0 + $0x98] ss:$76 sps:$4 sm:$0xff]   ;;  %v2586_v61 = vld [vmem:[%s3408_s1 + $0x110] sm:$0xff]  }
  0x15   :  { %2282 = vmatpush3.bf16.msra.mxu1 %v2540_v19  ;;  %2255 = vmatprep.subr.bf16.mxu0 %v2541_v20  ;;  %v2581_v56 = vld [vmem:[%s3408_s1 + $0x1d8] sm:$0xff]   ;;  %v2587_v62 = vld [vmem:[%s3408_s1 + $0x1d0] sm:$0xff]   ;;  %v2589_v0 = vld [vmem:[%s3408_s1 + $0x148] sm:$0xff]  }
  0x16   :  { %2283 = vmatprep.subr.bf16.mxu1 %v2542_v21  ;;  %v2584_v59 = vld [vmem:[%s3408_s1 + $0x198] sm:$0xff]   ;;  %v2588_v63 = vld [vmem:[%s3408_s1 + $0x190] sm:$0xff]   ;;  %v2590_v1 = vld [vmem:[%s3408_s1 + $0x108] sm:$0xff]  }
  0x17   :  { %v2591_v2 = vld [vmem:[%s3408_s1 + $0x1c8] sm:$0xff]   ;;  %v2593_v4 = vld [vmem:[%s3408_s1 + $0x140] sm:$0xff]   ;;  %v2596_v7 = vld [vmem:[%s3409_s0 + $0x10] ss:$76 sps:$4 sm:$0xff]  }
  0x18   :  { %2256 = vmatpush3.bf16.msra.mxu0 %v2543_v22  ;;  %v2592_v3 = vld [vmem:[%s3408_s1 + $0x188] sm:$0xff]   ;;  %v2594_v5 = vld [vmem:[%s3408_s1 + $0x100] sm:$0xff]   ;;  %v2600_v10 = vld [vmem:[%s3408_s1 + $0x278] sm:$0xff]  }
  0x19   :  { %2284 = vmatpush3.bf16.msra.mxu1 %v2544_v23  ;;  %2257 = vmatprep.subr.bf16.mxu0 %v2545_v24  ;;  %v2595_v6 = vld [vmem:[%s3408_s1 + $0x1c0] sm:$0xff]   ;;  %v2603_v12 = vld [vmem:[%s3409_s0 + $0x1c] ss:$76 sps:$4 sm:$0xff]   ;;  %v2607_v16 = vld [vmem:[%s3408_s1 + $0x270] sm:$0xff]  }
  0x1a   :  { %2285 = vmatprep.subr.bf16.mxu1 %v2546_v25  ;;  %v2598_v8 = vld [vmem:[%s3409_s0 + $0x14] ss:$76 sps:$4 sm:$0xff]   ;;  %v2601_v11 = vld [vmem:[%s3409_s0 + $0x18] ss:$76 sps:$4 sm:$0xff]   ;;  %v2614_v22 = vld [vmem:[%s3408_s1 + $0x268] sm:$0xff]  }
  0x1b   :  { %v2599_v9 = vld [vmem:[%s3408_s1 + $0x180] sm:$0xff]   ;;  %v2604_v13 = vld [vmem:[%s3408_s1 + $0x238] sm:$0xff]   ;;  %v2608_v17 = vld [vmem:[%s3408_s1 + $0x230] sm:$0xff]  }
  0x1c   :  { %2258 = vmatpush3.bf16.msra.mxu0 %v2547_v26  ;;  %v2605_v14 = vld [vmem:[%s3408_s1 + $0x2f8] sm:$0xff]   ;;  %v2609_v18 = vld [vmem:[%s3408_s1 + $0x2f0] sm:$0xff]   ;;  %v2617_v24 = vld [vmem:[%s3408_s1 + $0x228] sm:$0xff]  }
  0x1d   :  { %2286 = vmatpush3.bf16.msra.mxu1 %v2548_v27  ;;  %2259 = vmatprep.subr.bf16.mxu0 %v2549_v28  ;;  %v2606_v15 = vld [vmem:[%s3408_s1 + $0x2b8] sm:$0xff]   ;;  %v2612_v20 = vld [vmem:[%s3408_s1 + $0x2b0] sm:$0xff]   ;;  %v2619_v26 = vld [vmem:[%s3408_s1 + $0x2e8] sm:$0xff]  }
  0x1e   :  { %2287 = vmatprep.subr.bf16.mxu1 %v2550_v29  ;;  %v2610_v19 = vld [vmem:[%s3409_s0 + $0xac] ss:$76 sps:$4 sm:$0xff]   ;;  %v2613_v21 = vld [vmem:[%s3409_s0 + $0xa8] ss:$76 sps:$4 sm:$0xff]   ;;  %v2618_v25 = vld [vmem:[%s3409_s0 + $0xb0] ss:$76 sps:$4 sm:$0xff]  }
  0x1f   :  { %v2615_v23 = vld [vmem:[%s3409_s0 + $0xb4] ss:$76 sps:$4 sm:$0xff]   ;;  %v2620_v27 = vld [vmem:[%s3408_s1 + $0x2a8] sm:$0xff]   ;;  %v2626_v33 = vld [vmem:[%s3408_s1 + $0x218] sm:$0xff]  }
  0x20   :  { %2260 = vmatpush3.bf16.msra.mxu0 %v2551_v30  ;;  %v2621_v28 = vld [vmem:[%s3408_s1 + $0x260] sm:$0xff]   ;;  %v2628_v35 = vld [vmem:[%s3408_s1 + $0x298] sm:$0xff]  }
  0x21   :  { %2288 = vmatpush3.bf16.msra.mxu1 %v2552_v31  ;;  %2301 = vmatprep.subr.bf16.mxu0 %v2559_v36  ;;  %v2622_v29 = vld [vmem:[%s3408_s1 + $0x220] sm:$0xff]   ;;  %v2629_v36 = vld [vmem:[%s3408_s1 + $0x250] sm:$0xff]  }
  0x22   :  { %2329 = vmatprep.subr.bf16.mxu1 %v2561_v38  ;;  %v2623_v30 = vld [vmem:[%s3408_s1 + $0x2e0] sm:$0xff]   ;;  %v2631_v38 = vld [vmem:[%s3408_s1 + $0x2d0] sm:$0xff]  }
  0x23   :  { %1488 = vmatmul.mubr.bf16.vlgmr.msra.gmra.mxu0 %v2553_v32  ;;  %v2624_v31 = vld [vmem:[%s3408_s1 + $0x2a0] sm:$0xff]   ;;  %v2625_v32 = vld [vmem:[%s3408_s1 + $0x258] sm:$0xff]  }
  0x24   :  { %1537 = vmatmul.mubr.bf16.vlgmr.msra.gmra.mxu1 %v2556_v34  ;;  %2302 = vmatpush3.bf16.msra.mxu0 %v2560_v37  ;;  %v2627_v34 = vld [vmem:[%s3408_s1 + $0x2d8] sm:$0xff]   ;;  %v2630_v37 = vld [vmem:[%s3408_s1 + $0x210] sm:$0xff]  }
  0x25   :  { %2330 = vmatpush3.bf16.msra.mxu1 %v2562_v39  ;;  %2303 = vmatprep.subr.bf16.mxu0 %v2563_v40  ;;  %v2632_v39 = vld [vmem:[%s3408_s1 + $0x290] sm:$0xff]   ;;  %v2633_v40 = vld [vmem:[%s3408_s1 + $0x248] sm:$0xff]  }
  0x26   :  { %2331 = vmatprep.subr.bf16.mxu1 %v2565_v42  ;;  %1495 = vmatprep.mubr.bf16.mxu0 %v2577_v54  ;;  %v2635_v42 = vld [vmem:[%s3408_s1 + $0x2c8] sm:$0xff]   ;;  %v2649_v54 = vld [vmem:[%s3408_s1 + $0x3f8] sm:$0xff]  }
  0x27   :  { %1544 = vmatprep.mubr.bf16.mxu1 %v2579_v55  ;;  %v2650_v55 = vld [vmem:[%s3408_s1 + $0x3b8] sm:$0xff]  }
  0x28   :  { %2304 = vmatpush3.bf16.msra.mxu0 %v2564_v41  ;;  %v2634_v41 = vld [vmem:[%s3408_s1 + $0x208] sm:$0xff]  }
  0x29   :  { %2332 = vmatpush3.bf16.msra.mxu1 %v2566_v43  ;;  %2305 = vmatprep.subr.bf16.mxu0 %v2567_v44  ;;  %v2636_v43 = vld [vmem:[%s3408_s1 + $0x288] sm:$0xff]   ;;  %v2637_v44 = vld [vmem:[%s3408_s1 + $0x240] sm:$0xff]  }
  0x2a   :  { %2333 = vmatprep.subr.bf16.mxu1 %v2569_v46  ;;  %v2639_v46 = vld [vmem:[%s3408_s1 + $0x2c0] sm:$0xff]  }
  0x2b   :  { %1496 = vmatmul.mubr.bf16.gmra.mxu0 %v2582_v57  ;;  %v2652_v57 = vld [vmem:[%s3408_s1 + $0x330] sm:$0xff]  }
  0x2c   :  { %2306 = vmatpush3.bf16.msra.mxu0 %v2568_v45  ;;  %1545 = vmatmul.mubr.bf16.gmra.mxu1 %v2583_v58  ;;  %v2638_v45 = vld [vmem:[%s3408_s1 + $0x200] sm:$0xff]   ;;  %v2653_v58 = vld [vmem:[%s3408_s1 + $0x3f0] sm:$0xff]  }
  0x2d   :  { %2334 = vmatpush3.bf16.msra.mxu1 %v2570_v47  ;;  %2307 = vmatprep.subr.bf16.mxu0 %v2571_v48  ;;  %v2640_v47 = vld [vmem:[%s3409_s0 + $0x20] ss:$76 sps:$4 sm:$0xff]   ;;  %v2642_v48 = vld [vmem:[%s3409_s0 + $0x24] ss:$76 sps:$4 sm:$0xff]  }
  0x2e   :  { %2335 = vmatprep.subr.bf16.mxu1 %v2573_v50  ;;  %1585 = vmatprep.mubr.bf16.mxu0 %v2598_v8  ;;  %v2644_v50 = vld [vmem:[%s3408_s1 + $0x378] sm:$0xff]  }
  0x2f   :  { %1634 = vmatprep.mubr.bf16.mxu1 %v2603_v12  ;;  %v2669_v8 = vld [vmem:[%s3408_s1 + $0x358] sm:$0xff]   ;;  %v2673_v12 = vld [vmem:[%s3408_s1 + $0x350] sm:$0xff]  }
  0x30   :  { %2308 = vmatpush3.bf16.msra.mxu0 %v2572_v49  ;;  %v2643_v49 = vld [vmem:[%s3408_s1 + $0x280] sm:$0xff]  }
  0x31   :  { %2336 = vmatpush3.bf16.msra.mxu1 %v2574_v51  ;;  %2309 = vmatprep.subr.bf16.mxu0 %v2575_v52  ;;  %v2645_v51 = vld [vmem:[%s3409_s0 + $0x28] ss:$76 sps:$4 sm:$0xff]   ;;  %v2647_v52 = vld [vmem:[%s3409_s0 + $0x2c] ss:$76 sps:$4 sm:$0xff]  }
  0x32   :  { %2337 = vmatprep.subr.bf16.mxu1 %v2581_v56  ;;  %v2651_v56 = vld [vmem:[%s3408_s1 + $0x370] sm:$0xff]  }
  0x34   :  { %2310 = vmatpush3.bf16.msra.mxu0 %v2576_v53  ;;  %v2648_v53 = vld [vmem:[%s3408_s1 + $0x338] sm:$0xff]  }
  0x35   :  { %2338 = vmatpush3.bf16.msra.mxu1 %v2584_v59  ;;  %2311 = vmatprep.subr.bf16.mxu0 %v2585_v60  ;;  %v2654_v59 = vld [vmem:[%s3409_s0 + $0xbc] ss:$76 sps:$4 sm:$0xff]   ;;  %v2656_v60 = vld [vmem:[%s3408_s1 + $0x3b0] sm:$0xff]  }
  0x36   :  { %2339 = vmatprep.subr.bf16.mxu1 %v2587_v62  ;;  %v2658_v62 = vld [vmem:[%s3408_s1 + $0x368] sm:$0xff]  }
  0x38   :  { %2312 = vmatpush3.bf16.msra.mxu0 %v2586_v61  ;;  %v2657_v61 = vld [vmem:[%s3409_s0 + $0xb8] ss:$76 sps:$4 sm:$0xff]  }
  0x39   :  { %2340 = vmatpush3.bf16.msra.mxu1 %v2588_v63  ;;  %2313 = vmatprep.subr.bf16.mxu0 %v2589_v0  ;;  %v2659_v63 = vld [vmem:[%s3409_s0 + $0xc4] ss:$76 sps:$4 sm:$0xff]   ;;  %v2661_v0 = vld [vmem:[%s3408_s1 + $0x328] sm:$0xff]  }
  0x3a   :  { %2341 = vmatprep.subr.bf16.mxu1 %v2591_v2  ;;  %v2663_v2 = vld [vmem:[%s3408_s1 + $0x3e8] sm:$0xff]  }
  0x3c   :  { %2314 = vmatpush3.bf16.msra.mxu0 %v2590_v1  ;;  %v2662_v1 = vld [vmem:[%s3409_s0 + $0xc0] ss:$76 sps:$4 sm:$0xff]  }
  0x3d   :  { %2342 = vmatpush3.bf16.msra.mxu1 %v2592_v3  ;;  %2315 = vmatprep.subr.bf16.mxu0 %v2593_v4  ;;  %v2664_v3 = vld [vmem:[%s3408_s1 + $0x3a8] sm:$0xff]   ;;  %v2665_v4 = vld [vmem:[%s3408_s1 + $0x360] sm:$0xff]  }
  0x3e   :  { %2343 = vmatprep.subr.bf16.mxu1 %v2595_v6  ;;  %v2667_v6 = vld [vmem:[%s3408_s1 + $0x3e0] sm:$0xff]  }
  0x40   :  { %2316 = vmatpush3.bf16.msra.mxu0 %v2594_v5  ;;  %v2666_v5 = vld [vmem:[%s3408_s1 + $0x320] sm:$0xff]  }
  0x41   :  { %2344 = vmatpush3.bf16.msra.mxu1 %v2599_v9  ;;  %2357 = vmatprep.subr.bf16.mxu0 %v2600_v10  ;;  %v2670_v9 = vld [vmem:[%s3408_s1 + $0x318] sm:$0xff]  }
  0x42   :  { %2385 = vmatprep.subr.bf16.mxu1 %v2605_v14  ;;  %v2671_v10 = vld [vmem:[%s3408_s1 + $0x3d8] sm:$0xff]   ;;  %v2675_v14 = vld [vmem:[%s3408_s1 + $0x3d0] sm:$0xff]  }
  0x43   :  { %1586 = vmatmul.mubr.bf16.vlgmr.msra.gmra.mxu0 %v2596_v7  ;;  %v2668_v7 = vld [vmem:[%s3408_s1 + $0x3a0] sm:$0xff]  }
  0x44   :  { %2358 = vmatpush3.bf16.msra.mxu0 %v2604_v13  ;;  %1635 = vmatmul.mubr.bf16.vlgmr.msra.gmra.mxu1 %v2601_v11  ;;  %v2672_v11 = vld [vmem:[%s3408_s1 + $0x398] sm:$0xff]   ;;  %v2674_v13 = vld [vmem:[%s3408_s1 + $0x310] sm:$0xff]  }
  0x45   :  { %2386 = vmatpush3.bf16.msra.mxu1 %v2606_v15  ;;  %2359 = vmatprep.subr.bf16.mxu0 %v2607_v16  ;;  %v2676_v15 = vld [vmem:[%s3408_s1 + $0x390] sm:$0xff]   ;;  %v2677_v16 = vld [vmem:[%s3408_s1 + $0x348] sm:$0xff]  }
  0x46   :  { %2387 = vmatprep.subr.bf16.mxu1 %v2609_v18  ;;  %1593 = vmatprep.mubr.bf16.mxu0 %v2610_v19  ;;  %v2679_v18 = vld [vmem:[%s3408_s1 + $0x3c8] sm:$0xff]  }
  0x47   :  { %1642 = vmatprep.mubr.bf16.mxu1 %v2615_v23  ;;  %v2680_v19 = vld [vmem:[%s3408_s1 + $0x388] sm:$0xff]   ;;  %v2684_v23 = vld [vmem:[%s3409_s0 + $0x30] ss:$76 sps:$4 sm:$0xff]  }
  0x48   :  { %2360 = vmatpush3.bf16.msra.mxu0 %v2608_v17  ;;  %v2678_v17 = vld [vmem:[%s3408_s1 + $0x308] sm:$0xff]  }
  0x49   :  { %2388 = vmatpush3.bf16.msra.mxu1 %v2612_v20  ;;  %2361 = vmatprep.subr.bf16.mxu0 %v2614_v22  ;;  %v2681_v20 = vld [vmem:[%s3408_s1 + $0x340] sm:$0xff]  }
  0x4a   :  { %2389 = vmatprep.subr.bf16.mxu1 %v2619_v26  ;;  %v2683_v22 = vld [vmem:[%s3408_s1 + $0x3c0] sm:$0xff]   ;;  %v2688_v26 = vld [vmem:[%s3408_s1 + $0x478] sm:$0xff]  }
  0x4b   :  { %1594 = vmatmul.mubr.bf16.gmra.mxu0 %v2613_v21  ;;  %v2682_v21 = vld [vmem:[%s3408_s1 + $0x300] sm:$0xff]  }
  0x4c   :  { %2362 = vmatpush3.bf16.msra.mxu0 %v2617_v24  ;;  %1643 = vmatmul.mubr.bf16.gmra.mxu1 %v2618_v25  ;;  %v2686_v24 = vld [vmem:[%s3409_s0 + $0x34] ss:$76 sps:$4 sm:$0xff]  }
  0x4d   :  { %2390 = vmatpush3.bf16.msra.mxu1 %v2620_v27  ;;  %2363 = vmatprep.subr.bf16.mxu0 %v2621_v28  ;;  %v2687_v25 = vld [vmem:[%s3408_s1 + $0x380] sm:$0xff]   ;;  %v2691_v28 = vld [vmem:[%s3409_s0 + $0x3c] ss:$76 sps:$4 sm:$0xff]  }
  0x4e   :  { %2391 = vmatprep.subr.bf16.mxu1 %v2623_v30  ;;  %1683 = vmatprep.mubr.bf16.mxu0 %v2642_v48  ;;  %v2689_v27 = vld [vmem:[%s3409_s0 + $0x38] ss:$76 sps:$4 sm:$0xff]   ;;  %v2693_v30 = vld [vmem:[%s3408_s1 + $0x470] sm:$0xff]   ;;  %v2713_v48 = vld [vmem:[%s3408_s1 + $0x488] sm:$0xff]  }
  0x4f   :  { %1732 = vmatprep.mubr.bf16.mxu1 %v2647_v52  ;;  %v2717_v52 = vld [vmem:[%s3408_s1 + $0x440] sm:$0xff]  }
  0x50   :  { %2364 = vmatpush3.bf16.msra.mxu0 %v2622_v29  ;;  %v2692_v29 = vld [vmem:[%s3408_s1 + $0x438] sm:$0xff]  }
  0x51   :  { %2392 = vmatpush3.bf16.msra.mxu1 %v2624_v31  ;;  %2365 = vmatprep.subr.bf16.mxu0 %v2625_v32  ;;  %v2694_v31 = vld [vmem:[%s3408_s1 + $0x430] sm:$0xff]   ;;  %v2695_v32 = vld [vmem:[%s3408_s1 + $0x4a8] sm:$0xff]  }
  0x52   :  { %2393 = vmatprep.subr.bf16.mxu1 %v2627_v34  ;;  %v2698_v34 = vld [vmem:[%s3409_s0 + $0xc8] ss:$76 sps:$4 sm:$0xff]  }
  0x54   :  { %2366 = vmatpush3.bf16.msra.mxu0 %v2626_v33  ;;  %v2696_v33 = vld [vmem:[%s3409_s0 + $0xcc] ss:$76 sps:$4 sm:$0xff]  }
  0x55   :  { %2394 = vmatpush3.bf16.msra.mxu1 %v2628_v35  ;;  %2367 = vmatprep.subr.bf16.mxu0 %v2629_v36  ;;  %v2699_v35 = vld [vmem:[%s3408_s1 + $0x468] sm:$0xff]   ;;  %v2700_v36 = vld [vmem:[%s3409_s0 + $0xd4] ss:$76 sps:$4 sm:$0xff]  }
  0x56   :  { %2395 = vmatprep.subr.bf16.mxu1 %v2631_v38  ;;  %v2703_v38 = vld [vmem:[%s3409_s0 + $0xd0] ss:$76 sps:$4 sm:$0xff]  }
  0x58   :  { %2368 = vmatpush3.bf16.msra.mxu0 %v2630_v37  ;;  %v2702_v37 = vld [vmem:[%s3408_s1 + $0x428] sm:$0xff]  }
  0x59   :  { %2396 = vmatpush3.bf16.msra.mxu1 %v2632_v39  ;;  %2369 = vmatprep.subr.bf16.mxu0 %v2633_v40  ;;  %v2704_v39 = vld [vmem:[%s3408_s1 + $0x4a0] sm:$0xff]  }
  0x5a   :  { %2397 = vmatprep.subr.bf16.mxu1 %v2635_v42  ;;  %v2705_v40 = vld [vmem:[%s3408_s1 + $0x460] sm:$0xff]   ;;  %v2707_v42 = vld [vmem:[%s3408_s1 + $0x498] sm:$0xff]  }
  0x5c   :  { %2370 = vmatpush3.bf16.msra.mxu0 %v2634_v41  ;;  %v2706_v41 = vld [vmem:[%s3408_s1 + $0x420] sm:$0xff]  }
  0x5d   :  { %2398 = vmatpush3.bf16.msra.mxu1 %v2636_v43  ;;  %2371 = vmatprep.subr.bf16.mxu0 %v2637_v44  ;;  %v2708_v43 = vld [vmem:[%s3408_s1 + $0x458] sm:$0xff]  }
  0x5e   :  { %2399 = vmatprep.subr.bf16.mxu1 %v2639_v46  ;;  %v2709_v44 = vld [vmem:[%s3408_s1 + $0x418] sm:$0xff]   ;;  %v2711_v46 = vld [vmem:[%s3408_s1 + $0x450] sm:$0xff]  }
  0x60   :  { %2372 = vmatpush3.bf16.msra.mxu0 %v2638_v45  ;;  %v2710_v45 = vld [vmem:[%s3408_s1 + $0x490] sm:$0xff]  }
  0x61   :  { %2400 = vmatpush3.bf16.msra.mxu1 %v2643_v49  ;;  %2413 = vmatprep.subr.bf16.mxu0 %v2644_v50  ;;  %v2714_v49 = vld [vmem:[%s3408_s1 + $0x448] sm:$0xff]   ;;  %v2716_v50 = vld [vmem:[%s3408_s1 + $0x480] sm:$0xff]  }
  0x62   :  { %2441 = vmatprep.subr.bf16.mxu1 %v2649_v54  ;;  %v2718_v54 = vld [vmem:[%s3408_s1 + $0x400] sm:$0xff]  }
  0x63   :  { %1684 = vmatmul.mubr.bf16.vlgmr.msra.gmra.mxu0 %v2640_v47  ;;  %v2712_v47 = vld [vmem:[%s3408_s1 + $0x410] sm:$0xff]  }
  0x64   :  { %2414 = vmatpush3.bf16.msra.mxu0 %v2648_v53  ;;  %1733 = vmatmul.mubr.bf16.vlgmr.msra.gmra.mxu1 %v2645_v51  ;;  %v2715_v51 = vld [vmem:[%s3408_s1 + $0x408] sm:$0xff]  }
  0x65   :  { %2442 = vmatpush3.bf16.msra.mxu1 %v2650_v55  ;;  %2415 = vmatprep.subr.bf16.mxu0 %v2651_v56  ;;  %v2719_v53 = vld [vmem:[%s3409_s0 + $0x48] ss:$76 sps:$4 sm:$0xff]   ;;  %v2723_v55 = vld [vmem:[%s3409_s0 + $0x44] ss:$76 sps:$4 sm:$0xff]   ;;  %v2720_v56 = vld [vmem:[%s3409_s0 + $0xe0] ss:$76 sps:$4 sm:$0xff]  }
  0x66   :  { %2443 = vmatprep.subr.bf16.mxu1 %v2653_v58  ;;  %1691 = vmatprep.mubr.bf16.mxu0 %v2654_v59  ;;  %v2724_v58 = vld [vmem:[%s3409_s0 + $0xdc] ss:$76 sps:$4 sm:$0xff]   ;;  %v2726_v59 = vld [vmem:[%s3409_s0 + $0xd8] ss:$76 sps:$4 sm:$0xff]  }
  0x67   :  { %1740 = vmatprep.mubr.bf16.mxu1 %v2659_v63 }
  0x68   :  { %2416 = vmatpush3.bf16.msra.mxu0 %v2652_v57  ;;  %v2721_v57 = vld [vmem:[%s3409_s0 + $0x40] ss:$76 sps:$4 sm:$0xff]  }
  0x69   :  { %2444 = vmatpush3.bf16.msra.mxu1 %v2656_v60  ;;  %2417 = vmatprep.subr.bf16.mxu0 %v2658_v62 }
  0x6a   :  { %2445 = vmatprep.subr.bf16.mxu1 %v2663_v2 }
  0x6b   :  { %1692 = vmatmul.mubr.bf16.gmra.mxu0 %v2657_v61 }
  0x6c   :  { %2418 = vmatpush3.bf16.msra.mxu0 %v2661_v0  ;;  %1741 = vmatmul.mubr.bf16.gmra.mxu1 %v2662_v1 }
  0x6d   :  { %2446 = vmatpush3.bf16.msra.mxu1 %v2664_v3  ;;  %2419 = vmatprep.subr.bf16.mxu0 %v2665_v4 }
  0x6e   :  { %2447 = vmatprep.subr.bf16.mxu1 %v2667_v6  ;;  %1781 = vmatprep.mubr.bf16.mxu0 %v2686_v24 }
  0x6f   :  { %1830 = vmatprep.mubr.bf16.mxu1 %v2691_v28 }
  0x70   :  { %2420 = vmatpush3.bf16.msra.mxu0 %v2666_v5 }
  0x71   :  { %2448 = vmatpush3.bf16.msra.mxu1 %v2668_v7  ;;  %2421 = vmatprep.subr.bf16.mxu0 %v2669_v8 }
  0x72   :  { %2449 = vmatprep.subr.bf16.mxu1 %v2671_v10 }
  0x74   :  { %2422 = vmatpush3.bf16.msra.mxu0 %v2670_v9 }
  0x75   :  { %2450 = vmatpush3.bf16.msra.mxu1 %v2672_v11  ;;  %2423 = vmatprep.subr.bf16.mxu0 %v2673_v12 }
  0x76   :  { %2451 = vmatprep.subr.bf16.mxu1 %v2675_v14 }
  0x78   :  { %2424 = vmatpush3.bf16.msra.mxu0 %v2674_v13 }
  0x79   :  { %2452 = vmatpush3.bf16.msra.mxu1 %v2676_v15  ;;  %2425 = vmatprep.subr.bf16.mxu0 %v2677_v16 }
  0x7a   :  { %2453 = vmatprep.subr.bf16.mxu1 %v2679_v18 }
  0x7c   :  { %2426 = vmatpush3.bf16.msra.mxu0 %v2678_v17 }
  0x7d   :  { %2454 = vmatpush3.bf16.msra.mxu1 %v2680_v19  ;;  %2427 = vmatprep.subr.bf16.mxu0 %v2681_v20 }
  0x7e   :  { %2455 = vmatprep.subr.bf16.mxu1 %v2683_v22 }
  0x80   :  { %2428 = vmatpush3.bf16.msra.mxu0 %v2682_v21 }
  0x81   :  { %2456 = vmatpush3.bf16.msra.mxu1 %v2687_v25  ;;  %2469 = vmatprep.subr.bf16.mxu0 %v2688_v26 }
  0x82   :  { %2505 = vmatprep.subr.bf16.mxu1 %v2695_v32 }
  0x83   :  { %1782 = vmatmul.mubr.bf16.vlgmr.msra.gmra.mxu0 %v2684_v23 }
  0x84   :  { %2470 = vmatpush3.bf16.msra.mxu0 %v2692_v29  ;;  %1831 = vmatmul.mubr.bf16.vlgmr.msra.gmra.mxu1 %v2689_v27 }
  0x85   :  { %2471 = vmatprep.subr.bf16.mxu0 %v2693_v30  ;;  %1789 = vmatprep.mubr.bf16.mxu0 %v2696_v33 }
  0x86   :  { %2506 = vmatpush3.bf16.msra.mxu1 %v2695_v32  ;;  %1838 = vmatprep.mubr.bf16.mxu1 %v2700_v36 }
  0x87   :  { %2507 = vmatprep.subr.bf16.mxu1 %v2704_v39 }
  0x88   :  { %2472 = vmatpush3.bf16.msra.mxu0 %v2694_v31 }
  0x89   :  { %2473 = vmatprep.subr.bf16.mxu0 %v2699_v35 }
  0x8a   :  { %2508 = vmatpush3.bf16.msra.mxu1 %v2704_v39 }
  0x8b   :  { %1790 = vmatmul.mubr.bf16.gmra.mxu0 %v2698_v34  ;;  %2509 = vmatprep.subr.bf16.mxu1 %v2707_v42 }
  0x8c   :  { %2474 = vmatpush3.bf16.msra.mxu0 %v2702_v37  ;;  %1839 = vmatmul.mubr.bf16.gmra.mxu1 %v2703_v38 }
  0x8d   :  { %2475 = vmatprep.subr.bf16.mxu0 %v2705_v40  ;;  %2517 = vmatprep.mubr.msk.bf16.mxu1 %vm1448_vm0, %v2719_v53 }
  0x8e   :  { %2510 = vmatpush3.bf16.msra.mxu1 %v2707_v42  ;;  %1879 = vmatprep.mubr.bf16.mxu0 %v2723_v55 }
  0x8f   :  { %2511 = vmatprep.subr.bf16.mxu1 %v2710_v45 }
  0x90   :  { %2476 = vmatpush3.bf16.msra.mxu0 %v2706_v41 }
  0x91   :  { %2477 = vmatprep.subr.bf16.mxu0 %v2708_v43 }
  0x92   :  { %2512 = vmatpush3.bf16.msra.mxu1 %v2710_v45 }
  0x93   :  { %2513 = vmatprep.subr.bf16.mxu1 %v2713_v48 }
  0x94   :  { %2478 = vmatpush3.bf16.msra.mxu0 %v2709_v44 }
  0x95   :  { %2479 = vmatprep.subr.bf16.mxu0 %v2711_v46 }
  0x96   :  { %2514 = vmatpush3.bf16.msra.mxu1 %v2713_v48 }
  0x97   :  { %2515 = vmatprep.subr.bf16.mxu1 %v2716_v50 }
  0x98   :  { %2480 = vmatpush3.bf16.msra.mxu0 %v2712_v47 }
  0x99   :  { %2481 = vmatprep.subr.bf16.mxu0 %v2714_v49 }
  0x9a   :  { %2516 = vmatpush3.bf16.msra.mxu1 %v2716_v50 }
  0x9c   :  { %2482 = vmatpush3.bf16.msra.mxu0 %v2715_v51 }
  0x9d   :  { %2483 = vmatprep.subr.bf16.mxu0 %v2717_v52  ;;  %2518 = vmatmul.mubr.msk.bf16.vlgmr.msra.gmra.mxu1 %vm1448_vm0, %v2720_v56 }
  0xa0   :  { %2484 = vmatpush3.bf16.msra.mxu0 %v2718_v54 }
  0xa3   :  { %1880 = vmatmul.mubr.bf16.vlgmr.msra.gmra.mxu0 %v2721_v57 }
  0xa4   :  { %1887 = vmatprep.mubr.bf16.mxu0 %v2724_v58 }
  0xab   :  { %1888 = vmatmul.mubr.bf16.gmra.mxu0 %v2726_v59 }
  0xe3   :  { %v2261_v61 = vpop.f32.mrf.mxu0 }
  0xe4   :  { %v2289_v60 = vpop.f32.mrf.mxu1 }
  0xe5   :  { %v2262_v63 = vpop.f32.mrf.mxu0 }
  0xe6   :  { %v2290_v62 = vpop.f32.mrf.mxu1  ;;  %v2263_v51 = vadd.f32 %v2262_v63, %v2261_v61 }
  0xe7   :  { %v2264_v1 = vpop.f32.mrf.mxu0  ;;  %v2291_v52 = vadd.f32 %v2290_v62, %v2289_v60 }
  0xe8   :  { %v2292_v0 = vpop.f32.mrf.mxu1 }
  0xe9   :  { %v2265_v3 = vpop.f32.mrf.mxu0  ;;  %v1539_v56 = vadd.f32 %v2291_v52, %v2263_v51 }
  0xea   :  { %v2293_v2 = vpop.f32.mrf.mxu1  ;;  %v2266_v57 = vadd.f32 %v2265_v3, %v2264_v1 }
  0xeb   :  { %v2267_v5 = vpop.f32.mrf.mxu0  ;;  %v2294_v58 = vadd.f32 %v2293_v2, %v2292_v0 }
  0xec   :  { %v2295_v4 = vpop.f32.mrf.mxu1 }
  0xed   :  { %v2268_v7 = vpop.f32.mrf.mxu0 }
  0xee   :  { %v2296_v6 = vpop.f32.mrf.mxu1 }
  0xef   :  { %v3320_v9 = vpop.f32.mrf.mxu0 }
  0xf0   :  { %v3318_v8 = vpop.f32.mrf.mxu1 }
  0xf1   :  { %3413 = vst [vmem:[#allocation2_spill] sm:$0xff] %v3318_v8  ;;  %v3324_v11 = vpop.f32.mrf.mxu0 }
  0xf2   :  { %v3322_v10 = vpop.f32.mrf.mxu1  ;;  %3415 = vst [vmem:[#allocation4_spill] sm:$0xff] %v3324_v11 }
  0xf3   :  { %3414 = vst [vmem:[#allocation3_spill] sm:$0xff] %v3322_v10  ;;  %v1542_v10 = vadd.f32 %v2294_v58, %v2266_v57 }
  0xf8   :  { %v3424_v1 = vld [vmem:[#allocation2_spill] sm:$0xff] }
  0xfa   :  { %v3425_v0 = vld [vmem:[#allocation3_spill] sm:$0xff] }
  0xfb   :  { %v2300_v2 = vadd.f32 %v3425_v0, %v3424_v1 }
 0x103   :  { %v2317_v13 = vpop.f32.mrf.mxu0 }
 0x104   :  { %v2345_v12 = vpop.f32.mrf.mxu1 }
 0x105   :  { %v2318_v15 = vpop.f32.mrf.mxu0 }
 0x106   :  { %v2346_v14 = vpop.f32.mrf.mxu1  ;;  %v2319_v54 = vadd.f32 %v2318_v15, %v2317_v13  ;;  %v3423_v13 = vld [vmem:[#allocation4_spill] sm:$0xff] }
 0x107   :  { %v2320_v17 = vpop.f32.mrf.mxu0  ;;  %v2272_v15 = vadd.f32 %v3423_v13, %v3320_v9 }
 0x108   :  { %v2348_v16 = vpop.f32.mrf.mxu1 }
 0x109   :  { %v2321_v19 = vpop.f32.mrf.mxu0 }
 0x10a   :  { %v2349_v18 = vpop.f32.mrf.mxu1 }
 0x10b   :  { %v2323_v21 = vpop.f32.mrf.mxu0  ;;  %v2350_v62 = vadd.f32 %v2349_v18, %v2348_v16 }
 0x10c   :  { %v2351_v20 = vpop.f32.mrf.mxu1 }
 0x10d   :  { %v2324_v23 = vpop.f32.mrf.mxu0 }
 0x10e   :  { %v2352_v22 = vpop.f32.mrf.mxu1  ;;  %v2325_v8 = vadd.f32 %v2324_v23, %v2323_v21  ;;  %v1550_v23 = vadd.f32 %v2300_v2, %v2272_v15 }
 0x10f   :  { %v2326_v25 = vpop.f32.mrf.mxu0 }
 0x110   :  { %v3326_v24 = vpop.f32.mrf.mxu1 }
 0x111   :  { %3416 = vst [vmem:[#allocation5_spill] sm:$0xff] %v3326_v24  ;;  %v2327_v27 = vpop.f32.mrf.mxu0 }
 0x112   :  { %v3328_v26 = vpop.f32.mrf.mxu1 }
 0x113   :  { %3417 = vst [vmem:[#allocation6_spill] sm:$0xff] %v3328_v26  ;;  %v2297_v26 = vadd.f32 %v2296_v6, %v2295_v4  ;;  %v2353_v6 = vadd.f32 %v2352_v22, %v2351_v20 }
 0x123   :  { %v2373_v29 = vpop.f32.mrf.mxu0 }
 0x124   :  { %v2401_v28 = vpop.f32.mrf.mxu1 }
 0x125   :  { %v2374_v31 = vpop.f32.mrf.mxu0 }
 0x126   :  { %v2402_v30 = vpop.f32.mrf.mxu1 }
 0x127   :  { %v2376_v33 = vpop.f32.mrf.mxu0 }
 0x128   :  { %v2404_v32 = vpop.f32.mrf.mxu1 }
 0x129   :  { %v2377_v35 = vpop.f32.mrf.mxu0 }
 0x12a   :  { %v2405_v34 = vpop.f32.mrf.mxu1 }
 0x12b   :  { %v2379_v37 = vpop.f32.mrf.mxu0 }
 0x12c   :  { %v3330_v36 = vpop.f32.mrf.mxu1 }
 0x12d   :  { %3418 = vst [vmem:[#allocation7_spill] sm:$0xff] %v3330_v36  ;;  %v2380_v39 = vpop.f32.mrf.mxu0  ;;  %v2269_v36 = vadd.f32 %v2268_v7, %v2267_v5  ;;  %v2378_v5 = vadd.f32 %v2377_v35, %v2376_v33  ;;  %v2328_v7 = vadd.f32 %v2327_v27, %v2326_v25 }
 0x12e   :  { %v3332_v38 = vpop.f32.mrf.mxu1 }
 0x12f   :  { %3419 = vst [vmem:[#allocation8_spill] sm:$0xff] %v3332_v38  ;;  %v2382_v41 = vpop.f32.mrf.mxu0  ;;  %v2322_v38 = vadd.f32 %v2321_v19, %v2320_v17  ;;  %v1547_v63 = vadd.f32 %v2297_v26, %v2269_v36  ;;  %v3426_v36 = vld [vmem:[#allocation5_spill] sm:$0xff] }
 0x130   :  { %v3334_v40 = vpop.f32.mrf.mxu1 }
 0x131   :  { %3420 = vst [vmem:[#allocation9_spill] sm:$0xff] %v3334_v40  ;;  %v2383_v43 = vpop.f32.mrf.mxu0  ;;  %v2347_v40 = vadd.f32 %v2346_v14, %v2345_v12  ;;  %v1591_v60 = vadd.f32 %v2322_v38, %v1542_v10  ;;  %v2403_v14 = vadd.f32 %v2402_v30, %v2401_v28  ;;  %v1596_v4 = vadd.f32 %v2325_v8, %v1547_v63  ;;  %v3427_v38 = vld [vmem:[#allocation6_spill] sm:$0xff] }
 0x132   :  { %v3336_v42 = vpop.f32.mrf.mxu1  ;;  %v2381_v10 = vadd.f32 %v2380_v39, %v2379_v37  ;;  %v2384_v35 = vadd.f32 %v2383_v43, %v2382_v41 }
 0x133   :  { %3421 = vst [vmem:[#allocation10_spill] sm:$0xff] %v3336_v42  ;;  %v1588_v42 = vadd.f32 %v2319_v54, %v1539_v56  ;;  %v1640_v19 = vadd.f32 %v2350_v62, %v1591_v60  ;;  %v1645_v9 = vadd.f32 %v2353_v6, %v1596_v4 }
 0x134   :  { %v3428_v25 = vld [vmem:[#allocation7_spill] sm:$0xff] }
 0x135   :  { %v1637_v61 = vadd.f32 %v2347_v40, %v1588_v42  ;;  %v1689_v26 = vadd.f32 %v2378_v5, %v1640_v19  ;;  %v2356_v40 = vadd.f32 %v3427_v38, %v3426_v36  ;;  %v1694_v22 = vadd.f32 %v2381_v10, %v1645_v9 }
 0x136   :  { %v3429_v27 = vld [vmem:[#allocation8_spill] sm:$0xff] }
 0x137   :  { %v2409_v33 = vadd.f32 %v3429_v27, %v3428_v25 }
 0x139   :  { %v1743_v57 = vadd.f32 %v2409_v33, %v1694_v22 }
 0x143   :  { %v2429_v45 = vpop.f32.mrf.mxu0 }
 0x144   :  { %v2457_v44 = vpop.f32.mrf.mxu1 }
 0x145   :  { %v2430_v47 = vpop.f32.mrf.mxu0 }
 0x146   :  { %v2458_v46 = vpop.f32.mrf.mxu1  ;;  %v2431_v21 = vadd.f32 %v2430_v47, %v2429_v45 }
 0x147   :  { %v2432_v49 = vpop.f32.mrf.mxu0  ;;  %v2459_v8 = vadd.f32 %v2458_v46, %v2457_v44  ;;  %v3431_v44 = vld [vmem:[#allocation9_spill] sm:$0xff]  ;;  %v3432_v46 = vld [vmem:[#allocation10_spill] sm:$0xff] }
 0x148   :  { %v3338_v48 = vpop.f32.mrf.mxu1 }
 0x149   :  { %3422 = vst [vmem:[#allocation11_spill] sm:$0xff] %v3338_v48  ;;  %v2433_v53 = vpop.f32.mrf.mxu0  ;;  %v2375_v48 = vadd.f32 %v2374_v31, %v2373_v29  ;;  %v2406_v29 = vadd.f32 %v2405_v34, %v2404_v32  ;;  %v1599_v31 = vadd.f32 %v2328_v7, %v1550_v23 }
 0x14a   :  { %v2461_v50 = vpop.f32.mrf.mxu1  ;;  %v2434_v20 = vadd.f32 %v2433_v53, %v2432_v49  ;;  %v2412_v49 = vadd.f32 %v3432_v46, %v3431_v44 }
 0x14b   :  { %v2435_v59 = vpop.f32.mrf.mxu0  ;;  %v1686_v12 = vadd.f32 %v2375_v48, %v1637_v61  ;;  %v1738_v39 = vadd.f32 %v2406_v29, %v1689_v26  ;;  %v1648_v45 = vadd.f32 %v2356_v40, %v1599_v31 }
 0x14c   :  { %v3340_v55 = vpop.f32.mrf.mxu1 }
 0x14d   :  { %v2436_v11 = vpop.f32.mrf.mxu0  ;;  %v1735_v18 = vadd.f32 %v2403_v14, %v1686_v12  ;;  %v1787_v51 = vadd.f32 %v2434_v20, %v1738_v39  ;;  %v1697_v58 = vadd.f32 %v2384_v35, %v1648_v45 }
 0x14e   :  { %v2464_v24 = vpop.f32.mrf.mxu1  ;;  %v2437_v47 = vadd.f32 %v2436_v11, %v2435_v59 }
 0x14f   :  { %v2438_v17 = vpop.f32.mrf.mxu0  ;;  %v1784_v30 = vadd.f32 %v2431_v21, %v1735_v18  ;;  %v2465_v41 = vadd.f32 %v2464_v24, %v3340_v55  ;;  %v1746_v15 = vadd.f32 %v2412_v49, %v1697_v58 }
 0x150   :  { %v2466_v3 = vpop.f32.mrf.mxu1  ;;  %v3430_v52 = vld [vmem:[#allocation11_spill] sm:$0xff]  ;;  %v1792_v60 = vadd.f32 %v2437_v47, %v1743_v57 }
 0x151   :  { %v2439_v42 = vpop.f32.mrf.mxu0  ;;  %v1833_v48 = vadd.f32 %v2459_v8, %v1784_v30  ;;  %v2462_v54 = vadd.f32 %v2461_v50, %v3430_v52 }
 0x152   :  { %v2467_v16 = vpop.f32.mrf.mxu1  ;;  %v2440_v43 = vadd.f32 %v2439_v42, %v2438_v17  ;;  %v1841_v2 = vadd.f32 %v2465_v41, %v1792_v60 }
 0x153   :  { %v1836_v59 = vadd.f32 %v2462_v54, %v1787_v51  ;;  %v2468_v14 = vadd.f32 %v2467_v16, %v2466_v3 }
 0x154   :  { %v1795_v12 = vadd.f32 %v2440_v43, %v1746_v15 }
 0x156   :  { %v1844_v29 = vadd.f32 %v2468_v14, %v1795_v12 }
 0x15d   :  { %v2519_v28 = vpop.f32.mrf.mxu1 }
 0x15f   :  { %v1930_v32 = vpop.f32.mrf.mxu1 }
 0x161   :  { %v2520_v62 = vpop.f32.mrf.mxu1 }
 0x163   :  { %v2485_v37 = vpop.f32.mrf.mxu0  ;;  %v1933_v5 = vpop.f32.mrf.mxu1 }
 0x165   :  { %v2486_v34 = vpop.f32.mrf.mxu0 }
 0x166   :  { %v2487_v56 = vadd.f32 %v2486_v34, %v2485_v37 }
 0x167   :  { %v2488_v53 = vpop.f32.mrf.mxu0 }
 0x168   :  { %v1882_v61 = vadd.f32 %v2487_v56, %v1833_v48 }
 0x169   :  { %v2489_v11 = vpop.f32.mrf.mxu0 }
 0x16a   :  { %v1931_v63 = vadd.f32 %v1930_v32, %v1882_v61  ;;  %v2490_v13 = vadd.f32 %v2489_v11, %v2488_v53 }
 0x16b   :  { %v2491_v50 = vpop.f32.mrf.mxu0 }
 0x16c   :  { %v1949_v1 = vcombine.high %v1931_v63, %v1931_v63  ;;  %v1885_v0 = vadd.f32 %v2490_v13, %v1836_v59  ;;  %v1958_v6 = vsel %vm1957_vm1, %v1931_v63, 0.0 }
 0x16d   :  { %v2492_v4 = vpop.f32.mrf.mxu0 }
 0x16e   :  { %v1959_v24 = vsel %vm1957_vm1, %v1949_v1, 0.0  ;;  %v1934_v55 = vadd.f32 %v1933_v5, %v1885_v0  ;;  %v2493_v7 = vadd.f32 %v2492_v4, %v2491_v50  ;;  %v2017_v4 = vld [vmem:[%s3410_s2] sm:$0xf] }
 0x16f   :  { %v1960_v17 = vadd.f32 %v1959_v24, %v1958_v6  ;;  %v2494_v19 = vpop.f32.mrf.mxu0 }
 0x170   :  { %v1950_v21 = vcombine.high %v1934_v55, %v1934_v55  ;;  %v1961_v23 = vsel %vm1957_vm1, %v1934_v55, 0.0  ;;  %v1890_v10 = vadd.f32 %v2493_v7, %v1841_v2 }
 0x171   :  { %v1962_v18 = vadd.f32 %v1961_v23, %v1960_v17  ;;  %v2495_v26 = vpop.f32.mrf.mxu0 }
 0x172   :  { %v1963_v9 = vsel %vm1957_vm1, %v1950_v21, 0.0  ;;  %v1939_v3 = vadd.f32 %v2519_v28, %v1890_v10  ;;  %v2496_v16 = vadd.f32 %v2495_v26, %v2494_v19  ;;  %v2026_v10 = vld [vmem:[%s3411_s3] sm:$0xf] }
 0x173   :  { %v1964_v31 = vadd.f32 %v1963_v9, %v1962_v18 }
 0x174   :  { %v1951_v36 = vcombine.high %v1939_v3, %v1939_v3  ;;  %v1965_v38 = vsel %vm1957_vm1, %v1939_v3, 0.0  ;;  %v1893_v40 = vadd.f32 %v2496_v16, %v1844_v29 }
 0x175   :  { %v1966_v42 = vadd.f32 %v1965_v38, %v1964_v31 }
 0x176   :  { %v1967_v30 = vsel %vm1957_vm1, %v1951_v36, 0.0  ;;  %v1942_v8 = vadd.f32 %v2520_v62, %v1893_v40 }
 0x177   :  { %v1968_v20 = vadd.f32 %v1967_v30, %v1966_v42 }
 0x178   :  { %v1952_v22 = vcombine.high %v1942_v8, %v1942_v8  ;;  %v1969_v25 = vsel %vm1957_vm1, %v1942_v8, 0.0 }
 0x179   :  { %v1970_v27 = vadd.f32 %v1969_v25, %v1968_v20 }
 0x17a   :  { %v1971_v33 = vsel %vm1957_vm1, %v1952_v22, 0.0 }
 0x17b   :  { %v1972_v35 = vadd.f32 %v1971_v33, %v1970_v27 }
 0x17d   :  { %v1974_v37 = vmul.f32 0.125, %v1972_v35 }
 0x17f   :  { %v1975_v28 = vsub.f32 %v1931_v63, %v1974_v37  ;;  %v1976_v39 = vsub.f32 %v1949_v1, %v1974_v37  ;;  %v1977_v45 = vsub.f32 %v1934_v55, %v1974_v37  ;;  %v1978_v47 = vsub.f32 %v1950_v21, %v1974_v37 }
 0x180   :  { %v1979_v32 = vsub.f32 %v1939_v3, %v1974_v37  ;;  %v1980_v52 = vsub.f32 %v1951_v36, %v1974_v37  ;;  %v1981_v44 = vsub.f32 %v1942_v8, %v1974_v37  ;;  %v1982_v61 = vsub.f32 %v1952_v22, %v1974_v37 }
 0x181   :  { %v1983_v34 = vmul.f32 %v1975_v28, %v1975_v28  ;;  %v1984_v48 = vmul.f32 %v1976_v39, %v1976_v39  ;;  %v1985_v51 = vmul.f32 %v1977_v45, %v1977_v45  ;;  %v1986_v54 = vmul.f32 %v1978_v47, %v1978_v47 }
 0x182   :  { %v1987_v46 = vmul.f32 %v1979_v32, %v1979_v32  ;;  %v1988_v60 = vmul.f32 %v1980_v52, %v1980_v52  ;;  %v1989_v62 = vmul.f32 %v1981_v44, %v1981_v44  ;;  %v1990_v63 = vmul.f32 %v1982_v61, %v1982_v61 }
 0x183   :  { %v1991_v56 = vsel %vm1957_vm1, %v1983_v34, 0.0  ;;  %v1992_v57 = vsel %vm1957_vm1, %v1984_v48, 0.0  ;;  %v1994_v49 = vsel %vm1957_vm1, %v1985_v51, 0.0  ;;  %v1996_v41 = vsel %vm1957_vm1, %v1986_v54, 0.0 }
 0x184   :  { %v1993_v58 = vadd.f32 %v1992_v57, %v1991_v56  ;;  %v1998_v11 = vsel %vm1957_vm1, %v1987_v46, 0.0  ;;  %v2000_v13 = vsel %vm1957_vm1, %v1988_v60, 0.0  ;;  %v2002_v50 = vsel %vm1957_vm1, %v1989_v62, 0.0 }
 0x185   :  { %v2004_v0 = vsel %vm1957_vm1, %v1990_v63, 0.0 }
 0x186   :  { %v1995_v53 = vadd.f32 %v1994_v49, %v1993_v58 }
 0x188   :  { %v1997_v43 = vadd.f32 %v1996_v41, %v1995_v53 }
 0x18a   :  { %v1999_v59 = vadd.f32 %v1998_v11, %v1997_v43 }
 0x18c   :  { %v2001_v15 = vadd.f32 %v2000_v13, %v1999_v59 }
 0x18e   :  { %v2003_v1 = vadd.f32 %v2002_v50, %v2001_v15 }
 0x190   :  { %v2005_v2 = vadd.f32 %v2004_v0, %v2003_v1 }
 0x192   :  { %v2006_v12 = vmul.f32 0.125, %v2005_v2 }
 0x194   :  { %v2007_v14 = vadd.f32 1e-05, %v2006_v12 }
 0x196   :  { %2727 = vrsqrt.f32 %v2007_v14 }
 0x1a3   :  { %v2728_v5 = vpop.eup %2727 }
 0x1a4   :  { %v2009_v6 = vmul.f32 %v2728_v5, %v1975_v28  ;;  %v2010_v24 = vmul.f32 %v2728_v5, %v1976_v39  ;;  %v2011_v55 = vmul.f32 %v2728_v5, %v1977_v45  ;;  %v2012_v7 = vmul.f32 %v2728_v5, %v1978_v47 }
 0x1a5   :  { %v2013_v17 = vmul.f32 %v2728_v5, %v1979_v32  ;;  %v2014_v19 = vmul.f32 %v2728_v5, %v1980_v52  ;;  %v2015_v21 = vmul.f32 %v2728_v5, %v1981_v44  ;;  %v2016_v23 = vmul.f32 %v2728_v5, %v1982_v61 }
 0x1a6   :  { %v2018_v18 = vmul.f32 %v2017_v4, %v2009_v6  ;;  %v2019_v26 = vmul.f32 %v2017_v4, %v2010_v24  ;;  %v2020_v29 = vmul.f32 %v2017_v4, %v2011_v55  ;;  %v2021_v9 = vmul.f32 %v2017_v4, %v2012_v7 }
 0x1a7   :  { %v2022_v3 = vmul.f32 %v2017_v4, %v2013_v17  ;;  %v2023_v16 = vmul.f32 %v2017_v4, %v2014_v19  ;;  %v2024_v31 = vmul.f32 %v2017_v4, %v2015_v21  ;;  %v2025_v36 = vmul.f32 %v2017_v4, %v2016_v23 }
 0x1a8   :  { %v2027_v38 = vadd.f32 %v2026_v10, %v2018_v18  ;;  %v2028_v40 = vadd.f32 %v2026_v10, %v2019_v26  ;;  %v2029_v42 = vadd.f32 %v2026_v10, %v2020_v29  ;;  %v2030_v30 = vadd.f32 %v2026_v10, %v2021_v9 }
 0x1a9   :  { %v2031_v8 = vadd.f32 %v2026_v10, %v2022_v3  ;;  %v2032_v20 = vadd.f32 %v2026_v10, %v2023_v16  ;;  %v2033_v22 = vadd.f32 %v2026_v10, %v2024_v31  ;;  %v2034_v25 = vadd.f32 %v2026_v10, %v2025_v36 }
 0x1aa   :  { %v2035_v27 = vmax.f32 %v2027_v38, 0.0  ;;  %v2036_v33 = vmax.f32 %v2028_v40, 0.0  ;;  %v2037_v35 = vmax.f32 %v2029_v42, 0.0  ;;  %v2038_v37 = vmax.f32 %v2030_v30, 0.0 }
 0x1ab   :  { %v2039_v28 = vmax.f32 %v2031_v8, 0.0  ;;  %v2040_v39 = vmax.f32 %v2032_v20, 0.0  ;;  %v2041_v45 = vmax.f32 %v2033_v22, 0.0  ;;  %v2042_v47 = vmax.f32 %v2034_v25, 0.0 }
 0x1ac   :  { %2043 = vst.msk [vmem:[%s3412_s4] sm:$0xf] %vm1957_vm1, %v2035_v27  ;;  %2044 = vst.msk [vmem:[%s3412_s4 + $0x4] sm:$0xf] %vm1957_vm1, %v2036_v33 }
 0x1ad   :  { %2045 = vst.msk [vmem:[%s3412_s4 + $0x8] sm:$0xf] %vm1957_vm1, %v2037_v35  ;;  %2046 = vst.msk [vmem:[%s3412_s4 + $0xc] sm:$0xf] %vm1957_vm1, %v2038_v37 }
 0x1ae   :  { %2047 = vst.msk [vmem:[%s3412_s4 + $0x10] sm:$0xf] %vm1957_vm1, %v2039_v28  ;;  %2048 = vst.msk [vmem:[%s3412_s4 + $0x14] sm:$0xf] %vm1957_vm1, %v2040_v39 }
 0x1af   :  { %2049 = vst.msk [vmem:[%s3412_s4 + $0x18] sm:$0xf] %vm1957_vm1, %v2041_v45  ;;  %2050 = vst.msk [vmem:[%s3412_s4 + $0x1c] sm:$0xf] %vm1957_vm1, %v2042_v47 }

</bundles_post_ra>
